<compile_context>
chip_gen: v7x
topology: tpu7x:2x2x1
jax: 0.10.0
libtpu: 0.0.40
codegen_flags: <defaults>
</compile_context>

<pallas_src>
import functools
import math

import jax
import jax.numpy as jnp
from jax.experimental import pallas as pl
from jax.experimental.pallas import tpu as pltpu


# ---------------------------------------------------------------------------
# Block / compiler-parameter helpers
# ---------------------------------------------------------------------------

def _pick_block(t, *, target=512, multiple=8):
    """Largest divisor of t that is a multiple of `multiple` and <= target."""
    if t <= target:
        return t
    start = target - (target % multiple)
    for b in range(start, multiple - 1, -multiple):
        if t % b == 0:
            return b
    return t  # TODO(synk): masked tails via pl.cdiv grids for awkward T.


def _pick_lane_block(n, *, target=512):
    """Largest divisor of n that is a multiple of 128 and <= target (else full n)."""
    if n <= target:
        return n
    start = target - (target % 128)
    for b in range(start, 127, -128):
        if n % b == 0:
            return b
    return n


def _compiler_params(sems, working_set_bytes):
    """dimension_semantics + a generation-aware VMEM limit with headroom."""
    phys = 64 << 20
    try:
        info = pltpu.get_tpu_info()
        phys = getattr(info, "vmem_capacity_bytes", 0) or phys
    except Exception:  # pragma: no cover - conservative fallback off-TPU
        pass
    limit = int(working_set_bytes * 1.75) + (4 << 20)
    limit = max(limit, 32 << 20)                 # never below the usual default
    limit = max(16 << 20, min(limit, int(phys * 0.85)))  # headroom below physical
    return pltpu.CompilerParams(dimension_semantics=sems, vmem_limit_bytes=limit)


# ---------------------------------------------------------------------------
# Kernels
# ---------------------------------------------------------------------------

def _linear_kernel(x_ref, w_ref, b_ref, o_ref, *, compute_dtype):
    """out = x @ w + b for one (batch, seq-block, out-channel-block) tile."""
    x = x_ref[0].astype(compute_dtype)                         # (bt, C_in)
    acc = jnp.dot(x, w_ref[...], preferred_element_type=jnp.float32)
    acc = acc + b_ref[...].astype(jnp.float32)                 # (1, bn) broadcast
    o_ref[0] = acc.astype(o_ref.dtype)


def _attention_kernel(q_ref, k_ref, v_ref, o_ref, m_ref, l_ref, acc_ref, *,
                      block, approx_recip):
    """Flash-style causal attention for one (batch, head, q-block); kv axis is last."""
    qi = pl.program_id(2)
    ki = pl.program_id(3)

    @pl.when(ki == 0)
    def _():
        m_ref[...] = jnp.full_like(m_ref, -jnp.inf)
        l_ref[...] = jnp.zeros_like(l_ref)
        acc_ref[...] = jnp.zeros_like(acc_ref)

    # Causal block skipping: fully-future KV blocks do nothing (and their index_map is
    # clamped so they are not even DMA'd).
    @pl.when(ki <= qi)
    def _():
        q = q_ref[0, 0, 0]                                     # (bq, D), scale folded in
        k = k_ref[0, 0, 0]                                     # (bkv, D)
        v = v_ref[0, 0, 0]                                     # (bkv, D)

        # Scores: contract the head dim of both operands directly (no explicit k.T).
        s = jax.lax.dot_general(q, k, (((1,), (1,)), ((), ())),
                                preferred_element_type=jnp.float32)  # (bq, bkv) fp32

        # Causal mask from two thin iotas (only the diagonal block actually changes
        # anything; cheap VPU filler overlapped with the MXU).
        row = qi * block + jax.lax.broadcasted_iota(jnp.int32, (block, 1), 0)
        col = ki * block + jax.lax.broadcasted_iota(jnp.int32, (1, block), 1)
        s = jnp.where(col <= row, s, -1e30)                    # finite fill: no NaNs

        # Online softmax update (fp32 state in VMEM scratch).
        m_prev = m_ref[...]
        m_new = jnp.maximum(m_prev, jnp.max(s, axis=-1, keepdims=True))
        alpha = jnp.exp(m_prev - m_new)
        p = jnp.exp(s - m_new)
        l_ref[...] = alpha * l_ref[...] + jnp.sum(p, axis=-1, keepdims=True)
        acc_ref[...] = alpha * acc_ref[...] + jnp.dot(
            p.astype(v.dtype), v, preferred_element_type=jnp.float32)
        m_ref[...] = m_new

    # ki == qi is the last relevant KV block for this query block.
    @pl.when(ki == qi)
    def _():
        inv = pl.reciprocal(l_ref[...], approx=approx_recip)   # EUP slot
        o_ref[0, 0] = (acc_ref[...] * inv).astype(o_ref.dtype)


# ---------------------------------------------------------------------------
# Wrappers
# ---------------------------------------------------------------------------

def _linear(x, w, b, *, out_dtype, compute_dtype, block_t, block_n=None):
    """y[b, t, :] = x[b, t, :] @ w + b via a (B, T//bt, C_out//bn) parallel grid."""
    B, T, c_in = x.shape
    c_out = w.shape[1]
    assert T % block_t == 0
    bn = block_n or _pick_lane_block(c_out)
    assert c_out % bn == 0

    w = w.astype(compute_dtype)
    b2 = b.reshape(1, c_out).astype(jnp.float32)

    isz = lambda dt: jnp.dtype(dt).itemsize
    work = (2 * block_t * c_in * isz(x.dtype)          # x blocks (double-buffered)
            + 2 * block_t * bn * isz(out_dtype)        # out blocks
            + 2 * c_in * bn * isz(compute_dtype)       # weight blocks
            + 2 * bn * 4                               # bias
            + block_t * bn * 4)                        # fp32 accumulator
    # TODO(synk): for very large C_in also tile K with a pl.when-initialized
    # fp32 accumulator (grid axis marked "arbitrary").

    kernel = functools.partial(_linear_kernel, compute_dtype=compute_dtype)
    return pl.pallas_call(
        kernel,
        out_shape=jax.ShapeDtypeStruct((B, T, c_out), out_dtype),
        grid=(B, T // block_t, c_out // bn),
        in_specs=[
            pl.BlockSpec((1, block_t, c_in), lambda bb, tt, nn: (bb, tt, 0)),
            pl.BlockSpec((c_in, bn), lambda bb, tt, nn: (0, nn)),
            pl.BlockSpec((1, bn), lambda bb, tt, nn: (0, nn)),
        ],
        out_specs=pl.BlockSpec((1, block_t, bn), lambda bb, tt, nn: (bb, tt, nn)),
        compiler_params=_compiler_params(("parallel", "parallel", "parallel"), work),
    )(x, w, b2)


def _attention(qkv, *, block, approx_recip):
    """Causal flash attention.  qkv: (3, B, H, T, D) with the score scale already
    folded into q.  Grid (B, H, T//block, T//block), KV axis last ("arbitrary")."""
    _, B, H, T, D = qkv.shape
    assert T % block == 0
    nb = T // block

    isz = jnp.dtype(qkv.dtype).itemsize
    work = (8 * block * D * isz            # q/out + double-buffered k/v blocks
            + 3 * block * block * 4        # fp32 scores / exp temporaries
            + block * D * 4                # fp32 accumulator
            + 2 * block * 128 * 4)         # m/l scratch (lane-padded)

    kernel = functools.partial(_attention_kernel, block=block,
                               approx_recip=approx_recip)
    # TODO(synk): sweep pipeline_mode=pl.Buffered(3) on the K/V specs once DMA is the
    # exposed bottleneck.
    return pl.pallas_call(
        kernel,
        out_shape=jax.ShapeDtypeStruct((B, H, T, D), qkv.dtype),
        grid=(B, H, nb, nb),
        in_specs=[
            pl.BlockSpec((1, 1, 1, block, D),
                         lambda b, h, qi, ki: (0, b, h, qi, 0)),
            pl.BlockSpec((1, 1, 1, block, D),
                         lambda b, h, qi, ki: (1, b, h, jnp.minimum(ki, qi), 0)),
            pl.BlockSpec((1, 1, 1, block, D),
                         lambda b, h, qi, ki: (2, b, h, jnp.minimum(ki, qi), 0)),
        ],
        out_specs=pl.BlockSpec((1, 1, block, D),
                               lambda b, h, qi, ki: (b, h, qi, 0)),
        scratch_shapes=[
            pltpu.VMEM((block, 1), jnp.float32),   # running max
            pltpu.VMEM((block, 1), jnp.float32),   # running denominator
            pltpu.VMEM((block, D), jnp.float32),   # output accumulator
        ],
        compiler_params=_compiler_params(
            ("parallel", "parallel", "parallel", "arbitrary"), work),
    )(qkv, qkv, qkv)


def self_attention(x, params, *, num_heads, compute_dtype=jnp.float32,
                   block_t=None, block_attn=None):
    """x: (B, T, C) float32.  params: dict of (w, b) with w stored as (C_in, C_out)
    (== torch weight transposed) and b as (C,).  compute_dtype=bf16 enables the fast
    MXU path (softmax / accumulation stay fp32)."""
    B, T, C = x.shape
    assert C % num_heads == 0
    D = C // num_heads
    scale = 1.0 / math.sqrt(D)

    wq, bq = params["query"]
    wk, bk = params["key"]
    wv, bv = params["value"]
    wp, bp = params["proj"]

    # Fused QKV projection with 1/sqrt(D) folded into the Q weights/bias (fp32 fold;
    # single bf16 rounding of the scaled weights on the fast path).
    w_qkv = jnp.concatenate([wq * scale, wk, wv], axis=1)     # (C, 3C)
    b_qkv = jnp.concatenate([bq * scale, bk, bv], axis=0)     # (3C,)

    bf16 = jnp.dtype(compute_dtype) == jnp.dtype(jnp.bfloat16)
    mult = 16 if bf16 else 8
    bt = block_t or _pick_block(T, target=512, multiple=mult)

    qkv = _linear(x, w_qkv, b_qkv, out_dtype=compute_dtype,
                  compute_dtype=compute_dtype, block_t=bt)    # (B, T, 3C)

    # Head split: one transpose pass; q/k/v are then read straight out of this single
    # array by the attention BlockSpecs (no per-tensor slice copies).
    qkv = qkv.reshape(B, T, 3, num_heads, D).transpose(2, 0, 3, 1, 4)  # (3,B,H,T,D)

    ba = block_attn or _pick_block(T, target=512, multiple=mult)
    y = _attention(qkv, block=ba, approx_recip=not jnp.dtype(compute_dtype) == jnp.dtype(jnp.float32))

    # Merge heads (torch: transpose(1,2).contiguous().view(B,T,C)) + output projection.
    y = y.transpose(0, 2, 1, 3).reshape(B, T, C)
    return _linear(y, wp, bp, out_dtype=x.dtype,
                   compute_dtype=compute_dtype, block_t=bt)


# ---------------------------------------------------------------------------
# Pure-JAX reference and deterministic init (mirror the PyTorch module)
# ---------------------------------------------------------------------------

def self_attention_ref(x, params, *, num_heads):
    B, T, C = x.shape
    D = C // num_heads

    def lin(inp, wb):
        w, b = wb
        return inp @ w + b

    q = lin(x, params["query"]).reshape(B, T, num_heads, D).transpose(0, 2, 1, 3)
    k = lin(x, params["key"]).reshape(B, T, num_heads, D).transpose(0, 2, 1, 3)
    v = lin(x, params["value"]).reshape(B, T, num_heads, D).transpose(0, 2, 1, 3)

    att = jnp.einsum("bhqd,bhkd->bhqk", q, k) / math.sqrt(D)
    mask = jnp.tril(jnp.ones((T, T), dtype=bool))
    att = jnp.where(mask[None, None], att, -jnp.inf)
    att = jax.nn.softmax(att, axis=-1)
    y = jnp.einsum("bhqk,bhkd->bhqd", att, v)
    y = y.transpose(0, 2, 1, 3).reshape(B, T, C)
    return lin(y, params["proj"])


def init_params(key, embed_dim):
    """nn.Linear-style init; weights stored as (C_in, C_out) == torch_weight.T."""
    bound = 1.0 / math.sqrt(embed_dim)
    params = {}
    for name in ("query", "key", "value", "proj"):
        key, kw, kb = jax.random.split(key, 3)
        w = jax.random.uniform(kw, (embed_dim, embed_dim), jnp.float32, -bound, bound)
        b = jax.random.uniform(kb, (embed_dim,), jnp.float32, -bound, bound)
        params[name] = (w, b)
    return params


if __name__ == "__main__":
    key = jax.random.PRNGKey(0)

    # Case 1: module-default small shapes, exact fp32 path.
    B, T, C, H = 2, 8, 32, 4
    key, kx, kp = jax.random.split(key, 3)
    x = jax.random.normal(kx, (B, T, C), jnp.float32)
    params = init_params(kp, C)

    with jax.default_matmul_precision("highest"):
        ref = self_attention_ref(x, params, num_heads=H)
    ref = jax.block_until_ready(ref)

    out = jax.block_until_ready(
        self_attention(x, params, num_heads=H, compute_dtype=jnp.float32))
    assert out.shape == (B, T, C)
    assert jnp.allclose(out, ref, atol=5e-5, rtol=5e-5), (
        float(jnp.max(jnp.abs(out - ref))))

    # Case 2: longer sequence with forced small blocks to exercise the flash KV loop,
    # causal block skipping (clamped index maps) and the multi-block tiled linears.
    B2, T2 = 2, 32
    key, kx2 = jax.random.split(key)
    x2 = jax.random.normal(kx2, (B2, T2, C), jnp.float32)
    with jax.default_matmul_precision("highest"):
        ref2 = self_attention_ref(x2, params, num_heads=H)
    out2 = jax.block_until_ready(
        self_attention(x2, params, num_heads=H, compute_dtype=jnp.float32,
                       block_t=16, block_attn=8))
    assert jnp.allclose(out2, ref2, atol=5e-5, rtol=5e-5), (
        float(jnp.max(jnp.abs(out2 - ref2))))

    # Case 3: bf16 MXU fast path (fp32 softmax / accumulation), loose tolerance.
    out_bf16 = jax.block_until_ready(
        self_attention(x, params, num_heads=H, compute_dtype=jnp.bfloat16))
    assert jnp.allclose(out_bf16, ref, atol=1e-1, rtol=1e-1), (
        float(jnp.max(jnp.abs(out_bf16 - ref))))

    print("KERNEL_OK")
</pallas_src>

<mosaic_0001>
module attributes {stable_mosaic.version = 11 : i64} {
  func.func @_linear_kernel(%arg0: i32, %arg1: i32, %arg2: i32, %arg3: memref<1x8x32xf32, #tpu.memory_space<vmem>>, %arg4: memref<32x96xf32, #tpu.memory_space<vmem>>, %arg5: memref<1x96xf32, #tpu.memory_space<vmem>>, %arg6: memref<1x8x96xf32, #tpu.memory_space<vmem>>) attributes {dimension_semantics = [#tpu.dimension_semantics<parallel>, #tpu.dimension_semantics<parallel>, #tpu.dimension_semantics<parallel>], iteration_bounds = array<i64: 2, 1, 1>, scalar_prefetch = 0 : i64, scratch_operands = 0 : i64, tpu.core_type = #tpu.core_type<tc>, window_params = [{transform_indices = @transform_0, window_bounds = array<i64: 1, 8, 32>}, {transform_indices = @transform_1, window_bounds = array<i64: 32, 96>}, {transform_indices = @transform_2, window_bounds = array<i64: 1, 96>}, {transform_indices = @transform_3, window_bounds = array<i64: 1, 8, 96>}]} {
    %c0 = arith.constant 0 : index
    %c0_0 = arith.constant 0 : index
    %c0_1 = arith.constant 0 : index
    %0 = vector.load %arg3[%c0, %c0_0, %c0_1] : memref<1x8x32xf32, #tpu.memory_space<vmem>>, vector<1x8x32xf32>
    %1 = vector.shape_cast %0 : vector<1x8x32xf32> to vector<8x32xf32>
    %c0_2 = arith.constant 0 : index
    %c0_3 = arith.constant 0 : index
    %2 = vector.load %arg4[%c0_2, %c0_3] : memref<32x96xf32, #tpu.memory_space<vmem>>, vector<32x96xf32>
    %cst = arith.constant dense<0.000000e+00> : vector<8x96xf32>
    %3 = tpu.matmul %1, %2, %cst {dimension_numbers = #tpu.dot_dimension_numbers<[1], [0], [0], [1], [0, 0, 1, 1], [], []>} : vector<8x32xf32>, vector<32x96xf32>, vector<8x96xf32> -> vector<8x96xf32>
    %c0_4 = arith.constant 0 : index
    %c0_5 = arith.constant 0 : index
    %4 = vector.load %arg5[%c0_4, %c0_5] : memref<1x96xf32, #tpu.memory_space<vmem>>, vector<1x96xf32>
    %5 = vector.broadcast %4 : vector<1x96xf32> to vector<8x96xf32>
    %6 = arith.addf %3, %5 : vector<8x96xf32>
    %c0_6 = arith.constant 0 : index
    %c0_7 = arith.constant 0 : index
    %c0_8 = arith.constant 0 : index
    %7 = vector.load %arg6[%c0_6, %c0_7, %c0_8] : memref<1x8x96xf32, #tpu.memory_space<vmem>>, vector<1x8x96xf32>
    %8 = vector.shape_cast %7 : vector<1x8x96xf32> to vector<8x96xf32>
    %9 = vector.shape_cast %6 : vector<8x96xf32> to vector<1x8x96xf32>
    tpu.vector_store %arg6[%c0_6, %c0_7, %c0_8], %9 {strides = array<i32>} : memref<1x8x96xf32, #tpu.memory_space<vmem>>, vector<1x8x96xf32>,
    return
  }
  func.func @transform_0(%arg0: i32, %arg1: i32, %arg2: i32) -> (i32, i32, i32) {
    %c0_i32 = arith.constant 0 : i32
    %c0_i32_0 = arith.constant 0 : i32
    return %arg0, %arg1, %c0_i32 : i32, i32, i32
  }
  func.func @transform_1(%arg0: i32, %arg1: i32, %arg2: i32) -> (i32, i32) {
    %c0_i32 = arith.constant 0 : i32
    %c0_i32_0 = arith.constant 0 : i32
    return %c0_i32, %arg2 : i32, i32
  }
  func.func @transform_2(%arg0: i32, %arg1: i32, %arg2: i32) -> (i32, i32) {
    %c0_i32 = arith.constant 0 : i32
    %c0_i32_0 = arith.constant 0 : i32
    return %c0_i32, %arg2 : i32, i32
  }
  func.func @transform_3(%arg0: i32, %arg1: i32, %arg2: i32) -> (i32, i32, i32) {
    %c0_i32 = arith.constant 0 : i32
    return %arg0, %arg1, %arg2 : i32, i32, i32
  }
}

</mosaic_0001>

<bundles_post_ra>
// kernel: tpu_custom_call.1
= control target key start
LH: loop header
LB: loop body
LE: loop exit
PB: predicated region body
PF: predicated region fallthrough
CT: control target
= control target key end

     0   :  { %8 = vsyncpa [#allocation3], 0  ;;  %s969_s0 = inlined_call_operand.hbm [shape: f32[2,8,32], index: 0, kind: input, shape index: {}]   ;;  %s970_s1 = inlined_call_operand.hbm [shape: f32[32,96], index: 1, kind: input, shape index: {}]   ;;  %s971_s2 = inlined_call_operand.vmem [shape: f32[1,96], index: 2, kind: input, shape index: {}]   ;;  %s972_s3 = inlined_call_operand.hbm [shape: f32[2,8,96], index: 3, kind: output, shape index: {}]  }
   0x1   :  { %10 = vsyncpa [#allocation3 + $0x1], 0 }
   0x2   :  { %11 = vsyncpa [#allocation6], 0 }
   0x3   :  { %12 = vsyncpa [#allocation4], 0 }
   0x4   :  { %14 = vsyncpa [#allocation4 + $0x1], 0  ;;  %s752_s12 = smov 0   ;;  %s754_s13 = smov 0  }
   0x5   :  { %s756_s14 = smov 0   ;;  %s758_s15 = smov 0  }
   0x6   :  { %s760_s16 = smov 0   ;;  %s762_s17 = smov 0  }
   0x7 LB: > { %s460_s18 = sadd.s32 4294967295, %s722_s17   ;;  %s461_s19 = sadd.s32 4294967294, %s722_s17   ;;  %s722_s17 = sphi %s762_s17, %s20_s17   ;;  %s718_s16 = sphi %s760_s16, %s996_s16   ;;  %s714_s15 = sphi %s758_s15, %s995_s15   ;;  %s710_s14 = sphi %s756_s14, %s994_s14   ;;  %s706_s13 = sphi %s754_s13, %s993_s13   ;;  %s702_s12 = sphi %s752_s12, %s992_s12  }
   0x8   : > { %p61_p0 = scmp.ne.s32.totalorder %s706_s13, %s702_s12  ;;  %p786_p1 = scmp.eq.s32.totalorder %s460_s18, 0 }
   0x9   : > { %p790_p2 = scmp.eq.s32.totalorder %s460_s18, 1  ;;  %p147_p3 = scmp.eq.s32.totalorder %s461_s19, 1 }
   0xa   : > { %s977_s20 = scalar_select %p786_p1, 1, 0 }
   0xb   : > { %s978_s21 = scalar_select %p790_p2, 1, 0 }
   0xc   : > { %p796_p4 = por %p786_p1, %p61_p0  ;;  %p462_p5 = scmp.ge.s32.totalorder %s722_s17, 1 }
   0xd   : > { %p801_p6 = por %p147_p3, %p61_p0  ;;  %p154_p7 = scmp.lt.s32.totalorder %s722_s17, 3 }
   0xe   : > { %s979_s22 = scalar_select %p796_p4, 1, 0 }
   0xf   : > { %s980_s23 = scalar_select %p801_p6, 1, 0 }
  0x10   : > { %p806_p8 = pnand %p462_p5, %p154_p7  ;;  %s724_s25 = smov [#allocation5]  }
  0x11   : > { %s168_s26 = sshll.u32 %s724_s25, 4  ;;  %s39_s28 = sadd.s32 1, %s718_s16  ;;  %s169_s26 = int_to_ptr.vmem [resolvable:$true] %s168_s26 }
  0x12   : > { %s981_s24 = scalar_select %p806_p8, 1, 0 }
  0x13   : > { %p508_p9 = pneg %p806_p8  ;;  %s578_s4 = scalar_lea.hbm %s970_s1, 512 }
  0x14   : > { %p579_p12 = scmp.ne.s32.totalorder %s970_s1, %s578_s4  ;;  %p585_p5 = scmp.lt.u32.totalorder %s578_s4, %s970_s1 }
  0x15   : > { %p815_p11 = pnand %p508_p9, %p786_p1 }
  0x17   : > { %p580_p13 = pneg %p815_p11 }
  0x19   : > { %p581_p0 = pnand %p580_p13, %p579_p12 }
  0x1b   : > { %p582_p3 = pneg %p581_p0 }
  0x1d   : > { %p587_p7 = pnand %p585_p5, %p582_p3 }
  0x1f   : > { %590 = shalt.err (!%p587_p7)
}
  0x20   : > { %s591_s9 = scalar_lea.vmem %s169_s26, 512  ;;  %p599_p1 = scmp.lt.s32.totalorder %s169_s26, %s169_s26 }
  0x21   : > { %p592_p9 = scmp.ne.s32.totalorder %s169_s26, %s591_s9  ;;  %p600_p4 = scmp.lt.s32.totalorder %s591_s9, %s591_s9 }
  0x23   : > { %p594_p10 = pnand %p592_p9, %p580_p13  ;;  %p601_p8 = por %p600_p4, %p599_p1 }
  0x25   : > { %p595_p6 = pneg %p594_p10 }
  0x27   : > { %p602_p2 = pnand %p601_p8, %p595_p6 }
  0x29   : > { %605 = shalt.err (!%p602_p2)
}
  0x2a   : > { %s725_s10 = smov 128   ;;  %s726_s11 = smov 8  }
  0x2b   : > { %511 = dma.hbm_to_vmem [thread:$0]  (!%p815_p11), %s970_s1, 512, %s169_s26, [#allocation6], %s725_s10, %s725_s10, %s726_s11  }
  0x2c   : > { %p41_p1 = scmp.ge.s32.totalorder %s39_s28, 2  ;;  %s48_s25 = sadd.s32 1, %s710_s14 }
  0x2d   : > { %p55_p2 = scmp.ne.s32.totalorder %s710_s14, %s706_s13  ;;  %p56_p4 = scmp.eq.s32.totalorder %s722_s17, 0 }
  0x2e   : > { %s998_s28 = smov (%p41_p1, %s39_s28), 0  ;;  %p984_p8 = scmp.ne.s32.totalorder %s978_s21, 0 }
  0x2f   : > { %p842_p6 = por %p56_p4, %p55_p2  ;;  %s43_s27 = ssub.s32 %s718_s16, %s998_s28 }
  0x30   : > { %p848_p10 = por %p984_p8, %p55_p2  ;;  %p521_p12 = scmp.lt.s32.totalorder %s722_s17, 2 }
  0x31   : > { %p46_p11 = scmp.eq.s32.totalorder %s43_s27, 0  ;;  %s188_s26 = sand.u32 1, %s710_s14  }
  0x32   : > { %s466_s4 = sshll.u32 %s188_s26, 3  ;;  %s467_s6 = sshll.u32 %s718_s16, 7 }
  0x33   : > { %s857_s5 = scalar_select %p46_p11, %s710_s14, %s48_s25  }
  0x34   : > { %s863_s9 = scalar_lea.hbm %s969_s0, %s467_s6  ;;  %s192_s21 = scalar_lea.vmem [#allocation2], %s466_s4 }
  0x35   : > { %s200_s10 = sshll.u32 %s192_s21, 4  ;;  %p869_p13 = pnand %p521_p12, %p842_p6  ;;  %s865_s10 = int_to_ptr.vmem [resolvable:$true] %s200_s10 }
  0x36   : > { %s189_s18 = scalar_lea.sflag [#allocation3], %s188_s26  ;;  %s606_s19 = scalar_lea.hbm %s863_s9, 128 }
  0x37   : > { %p607_p0 = scmp.ne.s32.totalorder %s863_s9, %s606_s19  ;;  %p608_p3 = pneg %p869_p13 }
  0x38   : > { %s611_s4 = scalar_lea.hbm %s969_s0, 256  ;;  %p612_p9 = scmp.lt.u32.totalorder %s863_s9, %s969_s0 }
  0x39   : > { %p609_p5 = pnand %p608_p3, %p607_p0  ;;  %p613_p1 = scmp.lt.u32.totalorder %s611_s4, %s606_s19 }
  0x3a   : > { %p615_p4 = scmp.lt.u32.totalorder %s606_s19, %s863_s9 }
  0x3b   : > { %p610_p7 = pneg %p609_p5  ;;  %p614_p2 = por %p613_p1, %p612_p9 }
  0x3d   : > { %p616_p6 = por %p615_p4, %p614_p2 }
  0x3f   : > { %p617_p8 = pnand %p616_p6, %p610_p7 }
  0x41   : > { %620 = shalt.err (!%p617_p8)
}
  0x42   : > { %s621_s26 = scalar_lea.vmem %s865_s10, 128  ;;  %s727_s7 = smov [#allocation2]  }
  0x43   : > { %p622_p12 = scmp.ne.s32.totalorder %s865_s10, %s621_s26  ;;  %s626_s8 = sshll.u32 %s727_s7, 4  ;;  %s627_s8 = int_to_ptr.vmem [resolvable:$false] %s626_s8 }
  0x44   : > { %s628_s21 = scalar_lea.vmem %s627_s8, 256  ;;  %p629_p5 = scmp.lt.s32.totalorder %s865_s10, %s627_s8 }
  0x45   : > { %p624_p11 = pnand %p622_p12, %p608_p3  ;;  %p630_p9 = scmp.lt.s32.totalorder %s628_s21, %s621_s26 }
  0x47   : > { %p625_p0 = pneg %p624_p11  ;;  %p631_p1 = por %p630_p9, %p629_p5 }
  0x49   : > { %p632_p2 = pnand %p631_p1, %p625_p0 }
  0x4b   : > { %635 = shalt.err (!%p632_p2)
}
  0x4c   : > { %515 = dma.hbm_to_vmem [thread:$0]  (!%p869_p13), %s863_s9, 128, %s865_s10, %s189_s18  }
  0x4d   : > { %p987_p7 = scmp.ne.s32.totalorder %s981_s24, 0 }
  0x4e   : > { %s901_s19 = sand.u32 (!%p987_p7), 1, %s706_s13   ;;  %p988_p3 = scmp.ne.s32.totalorder (!%p987_p7), %s979_s22, 0 }
  0x4f   : > { %209 = sbr.rel (%p987_p7) target bundleno = 329 (0x149), region = 32  ;;  %s469_s25 = sshll.u32 (!%p987_p7), %s901_s19, 3 }
  0x50   : > { %s212_s27 = scalar_lea.sflag (!%p987_p7), [#allocation3], %s901_s19  ;;  %s215_s4 = scalar_lea.vmem (!%p987_p7), [#allocation2], %s469_s25 }
  0x56   : > { %689 = dma.done.wait (%p988_p3), %s212_s27, 128  }
  0x57   : > { %691 = vsyncadd (%p988_p3), %s212_s27, 4294967168  ;;  %p989_p4 = scmp.ne.s32.totalorder %s977_s20, 0 }
  0x59   : > { %693 = dma.done.wait (%p989_p4), [#allocation6], 512  }
  0x5a   : > { %695 = vsyncadd (%p989_p4), [#allocation6], 4294966784  ;;  %v728_v0 = vmov 0.0|0.0   ;;  %vm729_vm0 = vmmov 0   ;;  %v730_v1 = vmov 0.0   ;;  %v249_v2 = vld [vmem:[#allocation5] sm:$0xff] }
  0x5b   : > { %494 = vmatprep.subr.bf16.mxu0 %v728_v0  ;;  %491 = vmatprep.mubr.msk.f32.mxu0 %vm729_vm0, %v730_v1  ;;  %v250_v3 = vld [vmem:[#allocation5 + $0x8] sm:$0xff]  ;;  %v251_v4 = vld [vmem:[#allocation5 + $0x10] sm:$0xff]  ;;  %v252_v6 = vld [vmem:[#allocation5 + $0x18] sm:$0xff]  ;;  %vm260_vm1 = vcmask 261120   ;;  %s475_s24 = sshll.u32 %s714_s15, 7  ;;  %s244_s9 = scalar_lea.vmem [#allocation7], %s469_s25 }
  0x5c   : > { %v495_v5 = vpack.c.bf16 %v250_v3, %v249_v2  ;;  %v498_v7 = vpack.c.bf16 %v252_v6, %v251_v4  ;;  %v248_v8 = vld [vmem:[%s215_s4] sm:$0xff]  ;;  %s352_s10 = sshll.u32 %s244_s9, 4  ;;  %vm334_vm2 = vcmask 785408   ;;  %s920_s29 = scalar_lea.hbm %s972_s3, %s475_s24  ;;  %s922_s10 = int_to_ptr.vmem [resolvable:$true] %s352_s10 }
  0x5d   : > { %v472_v9 = vld [vmem:[%s971_s2] ss:$0 sm:$0xff]  ;;  %s337_s6 = scalar_lea.sflag [#allocation4], %s901_s19  ;;  %s636_s26 = scalar_lea.vmem %s922_s10, 128 }
  0x5e   : > { %496 = vmatpush3.bf16.msra.mxu0 %v495_v5  ;;  %p637_p13 = scmp.ne.s32.totalorder %s922_s10, %s636_s26  ;;  %s731_s15 = smov [#allocation7]  }
  0x5f   : > { %497 = vmatprep.subr.bf16.mxu0 %v728_v0  ;;  %s640_s7 = sshll.u32 %s731_s15, 4  ;;  %s641_s7 = int_to_ptr.vmem [resolvable:$false] %s640_s7 }
  0x60   : > { %p638_p6 = pnand %p637_p13, %p848_p10  ;;  %s642_s8 = scalar_lea.vmem %s641_s7, 256 }
  0x61   : > { %p643_p12 = scmp.lt.s32.totalorder %s922_s10, %s641_s7  ;;  %p644_p11 = scmp.lt.s32.totalorder %s642_s8, %s636_s26 }
  0x62   : > { %499 = vmatpush3.bf16.msra.mxu0 %v498_v7  ;;  %p639_p8 = pneg %p638_p6 }
  0x63   : > { %p645_p0 = por %p644_p11, %p643_p12 }
  0x65   : > { %492 = vmatmul.mubr.msk.f32.vlgmr.msra.gmra.mrb[0].mxu0 %vm260_vm1, %v248_v8  ;;  %p646_p5 = pnand %p645_p0, %p639_p8 }
 0x138   : > { %v330_v10 = vpop.f32.mrb[0].mxu0 }
 0x139   : > { %v331_v11 = vadd.f32 %v472_v9, %v330_v10  ;;  %v493_v12 = vpop.f32.mrb[1].mxu0 }
 0x13b   : > { %335 = vst.msk [vmem:[%s244_s9] sm:$0xff] %vm334_vm2, %v331_v11 }
 0x13c   : > { %649 = shalt.err (!%p646_p5)
}
 0x13d   : > { %s650_s21 = scalar_lea.hbm %s920_s29, 128  ;;  %s654_s27 = scalar_lea.hbm %s972_s3, 256 }
 0x13e   : > { %p651_p9 = scmp.ne.s32.totalorder %s920_s29, %s650_s21  ;;  %p655_p7 = scmp.lt.u32.totalorder %s920_s29, %s972_s3 }
 0x13f   : > { %p656_p3 = scmp.lt.u32.totalorder %s654_s27, %s650_s21  ;;  %p658_p13 = scmp.lt.u32.totalorder %s650_s21, %s920_s29 }
 0x140   : > { %p652_p1 = pnand %p651_p9, %p848_p10 }
 0x141   : > { %p657_p4 = por %p656_p3, %p655_p7 }
 0x142   : > { %p653_p2 = pneg %p652_p1 }
 0x143   : > { %p659_p6 = por %p658_p13, %p657_p4 }
 0x145   : > { %p660_p8 = pnand %p659_p6, %p653_p2 }
 0x147   : > { %663 = shalt.err (!%p660_p8)
}
 0x148   : > { %506 = dma.vmem_to_hbm [thread:$0]  (%p848_p10), %s922_s10, 128, %s920_s29, %s337_s6  }
 0x149 PF: > { %s364_s22 = sand.u32 1, %s702_s12   ;;  %p990_p12 = scmp.ne.s32.totalorder %s980_s23, 0 }
 0x14a   : > { %p991_p11 = scmp.ge.s32.totalorder %s722_s17, 2  ;;  %s365_s24 = scalar_lea.sflag [#allocation4], %s364_s22 }
 0x14c   : > { %p517_p0 = pnand %p991_p11, %p990_p12 }
 0x14e   : > { %697 = dma.done.wait (!%p517_p0), %s365_s24, 128  }
 0x14f   : > { %699 = vsyncadd (!%p517_p0), %s365_s24, 4294967168  ;;  %s20_s17 = sadd.s32 1, %s722_s17   ;;  %s992_s12 = smov %s706_s13 }
 0x150   : > { %p17_p5 = scmp.ge.s32.totalorder %s20_s17, 4   ;;  %s993_s13 = smov %s710_s14 }
 0x151   : > { %s994_s14 = smov %s857_s5  ;;  %s995_s15 = smov %s718_s16 }
 0x152   : > { %s996_s16 = smov %s998_s28  ;;  %19 = sbr.rel (!%p17_p5) target bundleno = 7 (0x7), region = 85 }
 0x159   :  { %370 = vsyncpa [#allocation3], 1 }
 0x15a   :  { %372 = vsyncpa [#allocation3 + $0x1], 1 }
 0x15b   :  { %373 = vsyncpa [#allocation6], 1 }
 0x15c   :  { %374 = vsyncpa [#allocation4], 1 }
 0x15d   :  { %376 = vsyncpa [#allocation4 + $0x1], 1 }

</bundles_post_ra>
